<compile_context>
chip_gen: v6e
topology: v6e:2x2x1
jax: 0.10.0
libtpu: 0.0.40
codegen_flags: <defaults>
</compile_context>

<pallas_src>
import jax
import jax.numpy as jnp
from jax.experimental import pallas as pl
from jax.experimental.pallas import tpu as pltpu


def _normalize_kernel(x_ref, mean_ref, inv_std_ref, o_ref):
    # x_ref:       (t_r, t_hw)   input dtype
    # mean_ref:    (t_r, 1)      f32
    # inv_std_ref: (t_r, 1)      f32
    x = x_ref[...].astype(jnp.float32)
    o_ref[...] = ((x - mean_ref[...]) * inv_std_ref[...]).astype(o_ref.dtype)


def _round_up(x, m):
    return (x + m - 1) // m * m


def _choose_fold(R, HW, tile_r):
    """Fold spatial columns into extra rows (power-of-2 steps) when R = N*C is
    small, keeping lanes a multiple of 128. Restores multi-sublane blocks and
    >1 block along the row axis for megacore sharding."""
    fold = 1
    while R * fold < tile_r and HW % (fold * 2 * 128) == 0:
        fold *= 2
    return fold


def normalization_wrapper_forward(x_nchw, mean_c, std_c, model_fn=None,
                                  tile_r=512, tile_hw=2048, donate_x=False):
    """(x - mean[:,None,None]) / std[:,None,None] as a lane-dense tiled Pallas
    kernel, then apply the wrapped model (plain JAX callable)."""
    N, C, H, W = x_nchw.shape
    HW = H * W
    R = N * C

    # Tile sizes: rows a multiple of 8, lanes a multiple of 128.
    tile_r = max(8, _round_up(tile_r, 8))
    tile_hw = max(128, _round_up(tile_hw, 128))

    # Fold spatial into rows when R is small (degenerate-R fix).
    fold = _choose_fold(R, HW, tile_r)
    rows = R * fold
    cols = HW // fold

    # Zero-copy lane-dense 2D view: rows = sample*channel(*fold), lanes = spatial.
    x2d = x_nchw.reshape(rows, cols)

    # Per-row statistics; reciprocal computed ONCE in f32.
    mean_rows = jnp.broadcast_to(
        mean_c.astype(jnp.float32)[None, :, None], (N, C, fold)).reshape(rows)
    inv_std_rows = jnp.broadcast_to(
        (1.0 / std_c.astype(jnp.float32))[None, :, None], (N, C, fold)).reshape(rows)

    t_r = min(tile_r, _round_up(rows, 8))
    t_hw = min(tile_hw, _round_up(cols, 128))

    grid_r = pl.cdiv(rows, t_r)
    grid_h = pl.cdiv(cols, t_hw)
    grid = (grid_r, grid_h)

    # Only the tiny stats arrays get padded (to full row tiles); padded rows
    # use inv_std = 1.0 so every lane stays finite.
    r_stat = grid_r * t_r
    mean_2d = jnp.pad(mean_rows, (0, r_stat - rows)).reshape(r_stat, 1)
    inv_std_2d = jnp.pad(inv_std_rows, (0, r_stat - rows),
                         constant_values=1.0).reshape(r_stat, 1)

    itemsize = jnp.dtype(x_nchw.dtype).itemsize
    cost = pl.CostEstimate(
        flops=2 * rows * cols,
        transcendentals=0,
        bytes_accessed=2 * rows * cols * itemsize + 2 * r_stat * 4,
    )

    grid_spec = pltpu.PrefetchScalarGridSpec(
        num_scalar_prefetch=0,
        grid=grid,
        in_specs=[
            pl.BlockSpec((t_r, t_hw), lambda r, h: (r, h)),
            # h is the innermost grid axis -> stats block stays VMEM-resident
            # across the spatial sweep.
            pl.BlockSpec((t_r, 1), lambda r, h: (r, 0)),
            pl.BlockSpec((t_r, 1), lambda r, h: (r, 0)),
        ],
        out_specs=pl.BlockSpec((t_r, t_hw), lambda r, h: (r, h)),
    )

    x_norm = pl.pallas_call(
        _normalize_kernel,
        out_shape=jax.ShapeDtypeStruct((rows, cols), x_nchw.dtype),
        grid_spec=grid_spec,
        compiler_params=pltpu.CompilerParams(
            # Both axes independent -> shards across v7x's 2 TensorCores.
            dimension_semantics=("parallel", "parallel"),
            # 4 MiB default block, in+out double-buffered ~16 MiB: safe within
            # the 32 MiB scoped budget on v5e/v6e/v7x (v7x: 64 MiB physical).
            vmem_limit_bytes=32 * 1024 * 1024,
        ),
        cost_estimate=cost,
        # x is dead after normalization when the caller donates it: reuse its
        # HBM buffer for the output (no change in bytes moved, less pressure).
        input_output_aliases=({0: 0} if donate_x else {}),
    )(x2d, mean_2d, inv_std_2d)

    x_norm = x_norm.reshape(N, C, H, W)   # zero-copy

    # TODO(synk): the wrapped `model` is an arbitrary user module; represented
    # here as identity (plain JAX callable) since the wrapper itself only owns
    # the normalization compute. When the real model is known, fold the
    # scale/shift into its first layer and skip this kernel entirely.
    if model_fn is None:
        model_fn = lambda t: t
    return model_fn(x_norm)


if __name__ == "__main__":
    key = jax.random.PRNGKey(0)
    N, C, H, W = 2, 4, 16, 16
    kx, km, ks = jax.random.split(key, 3)

    x = jax.random.normal(kx, (N, C, H, W), dtype=jnp.float32)
    # Deterministic per-channel mean / std buffers (std kept positive).
    mean = jax.random.normal(km, (C,), dtype=jnp.float32) * 0.1 + 0.5
    std = jax.random.uniform(ks, (C,), dtype=jnp.float32, minval=0.2, maxval=1.0)

    out = normalization_wrapper_forward(x, mean, std)
    out = jax.block_until_ready(out)

    # Reference (pure JAX) check of the wrapper semantics.
    ref = (x - mean[None, :, None, None]) / std[None, :, None, None]
    assert out.shape == x.shape and out.dtype == x.dtype
    assert jnp.allclose(out, ref, atol=1e-5, rtol=1e-5), "mismatch vs reference"

    print("KERNEL_OK")
</pallas_src>

<mosaic_0001>
module attributes {stable_mosaic.version = 11 : i64} {
  func.func @_normalize_kernel(%arg0: i32, %arg1: i32, %arg2: memref<16x128xf32, #tpu.memory_space<vmem>>, %arg3: memref<16x1xf32, #tpu.memory_space<vmem>>, %arg4: memref<16x1xf32, #tpu.memory_space<vmem>>, %arg5: memref<16x128xf32, #tpu.memory_space<vmem>>) attributes {dimension_semantics = [#tpu.dimension_semantics<parallel>, #tpu.dimension_semantics<parallel>], iteration_bounds = array<i64: 1, 1>, scalar_prefetch = 0 : i64, scratch_operands = 0 : i64, tpu.core_type = #tpu.core_type<tc>, window_params = [{transform_indices = @transform_0, window_bounds = array<i64: 16, 128>}, {transform_indices = @transform_1, window_bounds = array<i64: 16, 1>}, {transform_indices = @transform_2, window_bounds = array<i64: 16, 1>}, {transform_indices = @transform_3, window_bounds = array<i64: 16, 128>}]} {
    %c0 = arith.constant 0 : index
    %c0_0 = arith.constant 0 : index
    %0 = vector.load %arg2[%c0, %c0_0] : memref<16x128xf32, #tpu.memory_space<vmem>>, vector<16x128xf32>
    %c0_1 = arith.constant 0 : index
    %c0_2 = arith.constant 0 : index
    %1 = vector.load %arg3[%c0_1, %c0_2] : memref<16x1xf32, #tpu.memory_space<vmem>>, vector<16x1xf32>
    %2 = vector.broadcast %1 : vector<16x1xf32> to vector<16x128xf32>
    %3 = arith.subf %0, %2 : vector<16x128xf32>
    %c0_3 = arith.constant 0 : index
    %c0_4 = arith.constant 0 : index
    %4 = vector.load %arg4[%c0_3, %c0_4] : memref<16x1xf32, #tpu.memory_space<vmem>>, vector<16x1xf32>
    %5 = vector.broadcast %4 : vector<16x1xf32> to vector<16x128xf32>
    %6 = arith.mulf %3, %5 : vector<16x128xf32>
    %c0_5 = arith.constant 0 : index
    %c0_6 = arith.constant 0 : index
    %7 = vector.load %arg5[%c0_5, %c0_6] : memref<16x128xf32, #tpu.memory_space<vmem>>, vector<16x128xf32>
    tpu.vector_store %arg5[%c0_5, %c0_6], %6 {strides = array<i32>} : memref<16x128xf32, #tpu.memory_space<vmem>>, vector<16x128xf32>,
    return
  }
  func.func @transform_0(%arg0: i32, %arg1: i32) -> (i32, i32) {
    %c0_i32 = arith.constant 0 : i32
    return %arg0, %arg1 : i32, i32
  }
  func.func @transform_1(%arg0: i32, %arg1: i32) -> (i32, i32) {
    %c0_i32 = arith.constant 0 : i32
    %c0_i32_0 = arith.constant 0 : i32
    return %arg0, %c0_i32 : i32, i32
  }
  func.func @transform_2(%arg0: i32, %arg1: i32) -> (i32, i32) {
    %c0_i32 = arith.constant 0 : i32
    %c0_i32_0 = arith.constant 0 : i32
    return %arg0, %c0_i32 : i32, i32
  }
  func.func @transform_3(%arg0: i32, %arg1: i32) -> (i32, i32) {
    %c0_i32 = arith.constant 0 : i32
    return %arg0, %arg1 : i32, i32
  }
}

</mosaic_0001>

<bundles_post_ra>
// kernel: tpu_custom_call.1
= control target key start
LH: loop header
LB: loop body
LE: loop exit
PB: predicated region body
PF: predicated region fallthrough
CT: control target
= control target key end

     0   :  { %v91_v2 = vmov 0   ;;  %s136_s0 = inlined_call_operand.vmem [shape: f32[16,128], index: 0, kind: input, shape index: {}]   ;;  %s137_s1 = inlined_call_operand.vmem [shape: f32[16,1], index: 1, kind: input, shape index: {}]   ;;  %s138_s2 = inlined_call_operand.vmem [shape: f32[16,1], index: 2, kind: input, shape index: {}]   ;;  %s139_s3 = inlined_call_operand.hbm [shape: f32[16,128], index: 3, kind: output, shape index: {}]  }
   0x1   :  { %v31_v0 = vld [vmem:[%s138_s2] sm:$0xff]  ;;  %68 = vset.pattern.permute.xlu1 %v91_v2  ;;  %67 = vset.pattern.permute.xlu0 %v91_v2 }
   0x2   :  { %v17_v1 = vld [vmem:[%s137_s1] sm:$0xff]  ;;  %35 = vperm.xlu1 %68, %v31_v0  }
   0x3   :  { %21 = vperm.xlu0 %67, %v17_v1  }
   0x4   :  { %8 = vsyncpa [#allocation3], 0  ;;  %v32_v3 = vld [vmem:[%s138_s2 + $0x8] sm:$0xff]  ;;  %v15_v5 = vld [vmem:[%s136_s0] sm:$0xff]  ;;  %s92_s24 = smov [#allocation2]  }
   0x5   :  { %v18_v4 = vld [vmem:[%s137_s1 + $0x8] sm:$0xff]  ;;  %s52_s2 = sshll.u32 %s92_s24, 4  ;;  %s53_s2 = int_to_ptr.vmem [resolvable:$true] %s52_s2 }
   0x6   :  { %40 = vperm.xlu1 %68, %v32_v3   ;;  %v16_v9 = vld [vmem:[%s136_s0 + $0x8] sm:$0xff]  ;;  %s69_s1 = scalar_lea.vmem %s53_s2, 256  ;;  %p74_p1 = scmp.lt.s32.totalorder %s53_s2, %s53_s2 }
   0x7   :  { %26 = vperm.xlu0 %67, %v18_v4   ;;  %p70_p0 = scmp.ne.s32.totalorder %s53_s2, %s69_s1  ;;  %p75_p2 = scmp.lt.s32.totalorder %s69_s1, %s69_s1 }
   0x9   :  { %p76_p3 = por %p75_p2, %p74_p1 }
   0xb   :  { %p77_p4 = pnand %p76_p3, %p70_p0 }
  0x7d   :  { %v36_v6 = vpop.permute.xlu1 %35 }
  0x7e   :  { %v22_v7 = vpop.permute.xlu0 %21 }
  0x7f   :  { %v29_v8 = vsub.f32 %v15_v5, %v22_v7 }
  0x81   :  { %v43_v10 = vmul.f32 %v36_v6, %v29_v8  ;;  %v41_v13 = vpop.permute.xlu1 %40 }
  0x82   :  { %v27_v11 = vpop.permute.xlu0 %26 }
  0x83   :  { %45 = vst [vmem:[#allocation2] sm:$0xff] %v43_v10  ;;  %v30_v12 = vsub.f32 %v16_v9, %v27_v11 }
  0x85   :  { %v44_v14 = vmul.f32 %v41_v13, %v30_v12 }
  0x87   :  { %46 = vst [vmem:[#allocation2 + $0x8] sm:$0xff] %v44_v14 }
  0x88   :  { %80 = shalt.err (!%p77_p4)
}
  0x89   :  { %s93_s25 = smov 128   ;;  %s94_s26 = smov 8  }
  0x8a   :  { %58 = dma.vmem_to_hbm [thread:$0]  %s53_s2, 256, %s139_s3, [#allocation3], %s93_s25, %s93_s25, %s94_s26  }
  0x8b   :  { %89 = dma.done.wait [#allocation3], 256  }
  0x8c   :  { %90 = vsyncadd [#allocation3], 4294967040 }
  0x8d   :  { %62 = vsyncpa [#allocation3], 1 }

</bundles_post_ra>
